<compile_context>
chip_gen: v5e
topology: v5e:2x2
jax: 0.10.0
libtpu: 0.0.40
codegen_flags: <defaults>
</compile_context>

<pallas_src>
import math
from functools import partial

import jax
import jax.numpy as jnp
from jax.experimental import pallas as pl
from jax.experimental.pallas import tpu as pltpu

TILE_T = 512  # lane-dense tile along the sample axis (multiple of 128)


# ----------------------------------------------------------------------------- Pallas kernel
def _sine_gen_kernel(f0_ref, ph_ref, hm_ref, ini_ref, gz_ref,
                     sine_ref, uv_ref, noise_ref, *,
                     upp, inv_sr, sine_amp, noise_std, voiced_threshold):
    """One (BD, TILE_T) tile of the sample-rate SineGen math, fully fused."""
    rows, tile = sine_ref.shape
    # global sample index of every lane in this tile
    t0 = pl.program_id(0) * tile
    col = jax.lax.broadcasted_iota(jnp.int32, (rows, tile), 1) + t0
    # intra-frame index a = (t % upp) + 1  (torch: a = arange(1, upp+1))
    a = ((col % upp) + 1).astype(jnp.float32)

    f0 = f0_ref[...]                                   # per-sample (nearest-upsampled) f0
    rad = (f0 * inv_sr) * a + ph_ref[...]              # base phase + per-frame accumulator
    rad = rad * hm_ref[...] + ini_ref[...]             # harmonic multiple + random init phase

    sine = jnp.sin((2.0 * math.pi) * rad) * sine_amp
    uv = (f0 > voiced_threshold).astype(jnp.float32)
    noise_amp = uv * noise_std + (1.0 - uv) * (sine_amp / 3.0)
    noise = noise_amp * gz_ref[...]

    sine_ref[...] = sine * uv + noise
    uv_ref[...] = uv
    noise_ref[...] = noise


# ----------------------------------------------------------------------------- wrapper
def sine_gen(f0, upp, samp_rate, *, harmonic_num=0, sine_amp=0.1,
             noise_std=0.003, voiced_threshold=0.0, key=None, tile_t=TILE_T):
    """SineGen.forward.  f0: (B, L) frame-rate F0 (Hz, >=0; 0 = unvoiced).

    Returns (sine_waves, uv, noise) with torch shapes
      sine_waves: (B, L*upp, dim), uv: (B, L*upp, 1), noise: (B, L*upp, dim).
    """
    f0 = f0.astype(jnp.float32)
    B, L = f0.shape
    dim = harmonic_num + 1
    T = L * upp
    BD = B * dim
    if key is None:
        key = jax.random.PRNGKey(0)
    k_noise, k_ini = jax.random.split(key)

    # ---- per-frame phase accumulation (tiny (B, L-1) op, plain JAX) ---------
    # matches torch:  rad2 = fmod(rad[:, :-1, -1] + 0.5, 1) - 0.5
    #                 rad_acc = fmod(cumsum(rad2), 1);  phase[frame 0] = 0
    # NOTE: relies on f0 >= 0 (jnp.fmod and torch.fmod share C sign semantics).
    # TODO(synk): f32 cumsum drifts for very long utterances exactly like the
    # torch reference; a per-step fmod scan would be more precise but would not
    # be bit-identical to the spec, so the reference behaviour is kept.
    rad_last = (f0[:, :-1] / samp_rate) * float(upp)
    rad2 = jnp.fmod(rad_last + 0.5, 1.0) - 0.5
    rad_acc = jnp.fmod(jnp.cumsum(rad2, axis=1), 1.0)
    phase = jnp.pad(rad_acc, ((0, 0), (1, 0)))                       # (B, L)

    # ---- nearest-neighbour upsample frame -> sample (cheap XLA broadcast) ---
    f0_up = jnp.repeat(f0, upp, axis=1)                              # (B, T)
    ph_up = jnp.repeat(phase, upp, axis=1)                           # (B, T)
    # one row per (batch, harmonic):  row r -> (b = r//dim, k = r%dim)
    f0_bd = jnp.repeat(f0_up, dim, axis=0)                           # (BD, T)
    ph_bd = jnp.repeat(ph_up, dim, axis=0)                           # (BD, T)

    # per-row harmonic multiplier and random initial phase (0 for fundamental)
    harm = jnp.tile(jnp.arange(1, dim + 1, dtype=jnp.float32), B).reshape(BD, 1)
    ini_row = jnp.zeros((dim,), jnp.float32)
    if dim > 1:
        # TODO(synk): torch.rand(rand_ini) is not bit-reproducible; jax.random used.
        ini_row = ini_row.at[1:].set(jax.random.uniform(k_ini, (dim - 1,), jnp.float32))
    ini = jnp.tile(ini_row, B).reshape(BD, 1)

    # ---- pad the sample axis to a lane-dense multiple of the tile ----------
    n_t = pl.cdiv(T, tile_t)
    Tp = n_t * tile_t
    pad = Tp - T
    if pad:
        f0_bd = jnp.pad(f0_bd, ((0, 0), (0, pad)))
        ph_bd = jnp.pad(ph_bd, ((0, 0), (0, pad)))

    # TODO(synk): torch.randn_like is not bit-reproducible; jax.random.normal used.
    gauss = jax.random.normal(k_noise, (BD, Tp), jnp.float32)

    kernel = partial(_sine_gen_kernel, upp=upp, inv_sr=1.0 / samp_rate,
                     sine_amp=sine_amp, noise_std=noise_std,
                     voiced_threshold=voiced_threshold)

    row_block = pl.BlockSpec((BD, tile_t), lambda t: (0, t))          # tiled along T
    per_row = pl.BlockSpec((BD, 1), lambda t: (0, 0))                 # resident scalars/row

    bytes_accessed = 4 * (3 * BD * Tp + 2 * BD) + 4 * 3 * BD * Tp
    sine_p, uv_p, noise_p = pl.pallas_call(
        kernel,
        out_shape=(jax.ShapeDtypeStruct((BD, Tp), jnp.float32),
                   jax.ShapeDtypeStruct((BD, Tp), jnp.float32),
                   jax.ShapeDtypeStruct((BD, Tp), jnp.float32)),
        grid=(n_t,),
        in_specs=[row_block, row_block, per_row, per_row, row_block],
        out_specs=(row_block, row_block, row_block),
        compiler_params=pltpu.CompilerParams(
            dimension_semantics=("parallel",)),
        cost_estimate=pl.CostEstimate(
            flops=12 * BD * Tp,
            transcendentals=BD * Tp,
            bytes_accessed=bytes_accessed),
    )(f0_bd, ph_bd, harm, ini, gauss)

    # ---- back to the torch layout ------------------------------------------
    sine_waves = sine_p[:, :T].reshape(B, dim, T).transpose(0, 2, 1)  # (B, T, dim)
    noise = noise_p[:, :T].reshape(B, dim, T).transpose(0, 2, 1)      # (B, T, dim)
    uv = uv_p[:, :T].reshape(B, dim, T)[:, 0, :].reshape(B, T, 1)     # (B, T, 1)
    return sine_waves, uv, noise


# ----------------------------------------------------------------------------- main
if __name__ == "__main__":
    SR = 16000
    UPP = 192            # samples per f0 frame (upsampling factor)
    B, L = 2, 8          # small shapes: batch=2, seq=8 frames -> 1536 samples

    key = jax.random.PRNGKey(0)
    kf, kv, kn = jax.random.split(key, 3)
    f0 = jnp.abs(jax.random.normal(kf, (B, L), jnp.float32)) * 200.0 + 80.0
    voiced = (jax.random.uniform(kv, (B, L)) > 0.3).astype(jnp.float32)
    f0 = f0 * voiced     # unvoiced frames have f0 == 0

    fwd = jax.jit(lambda f0_, k_: sine_gen(f0_, UPP, SR, key=k_))
    sine_waves, uv, noise = fwd(f0, kn)
    sine_waves, uv, noise = jax.block_until_ready((sine_waves, uv, noise))

    T = L * UPP
    assert sine_waves.shape == (B, T, 1), sine_waves.shape
    assert uv.shape == (B, T, 1), uv.shape
    assert noise.shape == (B, T, 1), noise.shape
    assert bool(jnp.all(jnp.isfinite(sine_waves)))
    assert bool(jnp.all((uv == 0.0) | (uv == 1.0)))
    assert float(jnp.max(jnp.abs(sine_waves))) < 0.5
    print("KERNEL_OK")
</pallas_src>

<mosaic_0001>
module attributes {stable_mosaic.version = 11 : i64} {
  func.func @_sine_gen_kernel(%arg0: i32, %arg1: memref<2x512xf32, #tpu.memory_space<vmem>>, %arg2: memref<2x512xf32, #tpu.memory_space<vmem>>, %arg3: memref<2x1xf32, #tpu.memory_space<vmem>>, %arg4: memref<2x1xf32, #tpu.memory_space<vmem>>, %arg5: memref<2x512xf32, #tpu.memory_space<vmem>>, %arg6: memref<2x512xf32, #tpu.memory_space<vmem>>, %arg7: memref<2x512xf32, #tpu.memory_space<vmem>>, %arg8: memref<2x512xf32, #tpu.memory_space<vmem>>) attributes {dimension_semantics = [#tpu.dimension_semantics<parallel>], iteration_bounds = array<i64: 3>, scalar_prefetch = 0 : i64, scratch_operands = 0 : i64, tpu.core_type = #tpu.core_type<tc>, window_params = [{transform_indices = @transform_0, window_bounds = array<i64: 2, 512>}, {transform_indices = @transform_1, window_bounds = array<i64: 2, 512>}, {pipeline_mode = #tpu.pipeline_mode<synchronous>, transform_indices = @transform_2, window_bounds = array<i64: 2, 1>}, {pipeline_mode = #tpu.pipeline_mode<synchronous>, transform_indices = @transform_3, window_bounds = array<i64: 2, 1>}, {transform_indices = @transform_4, window_bounds = array<i64: 2, 512>}, {transform_indices = @transform_5, window_bounds = array<i64: 2, 512>}, {transform_indices = @transform_6, window_bounds = array<i64: 2, 512>}, {transform_indices = @transform_7, window_bounds = array<i64: 2, 512>}]} {
    %c512_i32 = arith.constant 512 : i32
    %0 = arith.muli %arg0, %c512_i32 : i32
    %1 = tpu.iota {dimensions = array<i32: 1>} : vector<2x512xi32>
    %2 = vector.broadcast %0 : i32 to vector<2x512xi32>
    %3 = arith.addi %1, %2 : vector<2x512xi32>
    %c192_i32 = arith.constant 192 : i32
    %c0_i32 = arith.constant 0 : i32
    %4 = arith.cmpi eq, %c192_i32, %c0_i32 : i32
    %c1_i32 = arith.constant 1 : i32
    %5 = arith.select %4, %c1_i32, %c192_i32 : i32
    %6 = vector.broadcast %5 : i32 to vector<2x512xi32>
    %7 = arith.remsi %3, %6 : vector<2x512xi32>
    %c0_i32_0 = arith.constant 0 : i32
    %8 = vector.broadcast %c0_i32_0 : i32 to vector<2x512xi32>
    %9 = arith.cmpi ne, %7, %8 : vector<2x512xi32>
    %c0_i32_1 = arith.constant 0 : i32
    %10 = vector.broadcast %c0_i32_1 : i32 to vector<2x512xi32>
    %11 = arith.cmpi slt, %7, %10 : vector<2x512xi32>
    %c0_i32_2 = arith.constant 0 : i32
    %12 = arith.cmpi slt, %5, %c0_i32_2 : i32
    %13 = vector.broadcast %12 : i1 to vector<2x512xi1>
    %14 = vector.broadcast %13 : vector<2x512xi1> to vector<2x512xi1>
    %15 = arith.xori %11, %14 : vector<2x512xi1>
    %16 = arith.andi %15, %9 : vector<2x512xi1>
    %17 = vector.broadcast %5 : i32 to vector<2x512xi32>
    %18 = arith.addi %7, %17 : vector<2x512xi32>
    %19 = arith.select %16, %18, %7 : vector<2x512xi1>, vector<2x512xi32>
    %c1_i32_3 = arith.constant 1 : i32
    %20 = vector.broadcast %c1_i32_3 : i32 to vector<2x512xi32>
    %21 = arith.addi %19, %20 : vector<2x512xi32>
    %22 = arith.sitofp %21 : vector<2x512xi32> to vector<2x512xf32>
    %c0 = arith.constant 0 : index
    %c0_4 = arith.constant 0 : index
    %23 = vector.load %arg1[%c0, %c0_4] : memref<2x512xf32, #tpu.memory_space<vmem>>, vector<2x512xf32>
    %cst = arith.constant 6.250000e-05 : f32
    %24 = vector.broadcast %cst : f32 to vector<2x512xf32>
    %25 = arith.mulf %23, %24 : vector<2x512xf32>
    %26 = arith.mulf %25, %22 : vector<2x512xf32>
    %c0_5 = arith.constant 0 : index
    %c0_6 = arith.constant 0 : index
    %27 = vector.load %arg2[%c0_5, %c0_6] : memref<2x512xf32, #tpu.memory_space<vmem>>, vector<2x512xf32>
    %28 = arith.addf %26, %27 : vector<2x512xf32>
    %c0_7 = arith.constant 0 : index
    %c0_8 = arith.constant 0 : index
    %29 = vector.load %arg3[%c0_7, %c0_8] : memref<2x1xf32, #tpu.memory_space<vmem>>, vector<2x1xf32>
    %30 = vector.broadcast %29 : vector<2x1xf32> to vector<2x512xf32>
    %31 = arith.mulf %28, %30 : vector<2x512xf32>
    %c0_9 = arith.constant 0 : index
    %c0_10 = arith.constant 0 : index
    %32 = vector.load %arg4[%c0_9, %c0_10] : memref<2x1xf32, #tpu.memory_space<vmem>>, vector<2x1xf32>
    %33 = vector.broadcast %32 : vector<2x1xf32> to vector<2x512xf32>
    %34 = arith.addf %31, %33 : vector<2x512xf32>
    %cst_11 = arith.constant 6.28318548 : f32
    %35 = vector.broadcast %cst_11 : f32 to vector<2x512xf32>
    %36 = arith.mulf %35, %34 : vector<2x512xf32>
    %37 = math.sin %36 : vector<2x512xf32>
    %cst_12 = arith.constant 1.000000e-01 : f32
    %38 = vector.broadcast %cst_12 : f32 to vector<2x512xf32>
    %39 = arith.mulf %37, %38 : vector<2x512xf32>
    %cst_13 = arith.constant 0.000000e+00 : f32
    %40 = vector.broadcast %cst_13 : f32 to vector<2x512xf32>
    %41 = arith.cmpf ogt, %23, %40 : vector<2x512xf32>
    %42 = arith.extui %41 : vector<2x512xi1> to vector<2x512xi32>
    %43 = arith.sitofp %42 : vector<2x512xi32> to vector<2x512xf32>
    %cst_14 = arith.constant 3.000000e-03 : f32
    %44 = vector.broadcast %cst_14 : f32 to vector<2x512xf32>
    %45 = arith.mulf %43, %44 : vector<2x512xf32>
    %cst_15 = arith.constant 1.000000e+00 : f32
    %46 = vector.broadcast %cst_15 : f32 to vector<2x512xf32>
    %47 = arith.subf %46, %43 : vector<2x512xf32>
    %cst_16 = arith.constant 0.0333333351 : f32
    %48 = vector.broadcast %cst_16 : f32 to vector<2x512xf32>
    %49 = arith.mulf %47, %48 : vector<2x512xf32>
    %50 = arith.addf %45, %49 : vector<2x512xf32>
    %c0_17 = arith.constant 0 : index
    %c0_18 = arith.constant 0 : index
    %51 = vector.load %arg5[%c0_17, %c0_18] : memref<2x512xf32, #tpu.memory_space<vmem>>, vector<2x512xf32>
    %52 = arith.mulf %50, %51 : vector<2x512xf32>
    %53 = arith.mulf %39, %43 : vector<2x512xf32>
    %54 = arith.addf %53, %52 : vector<2x512xf32>
    %c0_19 = arith.constant 0 : index
    %c0_20 = arith.constant 0 : index
    %55 = vector.load %arg6[%c0_19, %c0_20] : memref<2x512xf32, #tpu.memory_space<vmem>>, vector<2x512xf32>
    tpu.vector_store %arg6[%c0_19, %c0_20], %54 {strides = array<i32>} : memref<2x512xf32, #tpu.memory_space<vmem>>, vector<2x512xf32>,
    %c0_21 = arith.constant 0 : index
    %c0_22 = arith.constant 0 : index
    %56 = vector.load %arg7[%c0_21, %c0_22] : memref<2x512xf32, #tpu.memory_space<vmem>>, vector<2x512xf32>
    tpu.vector_store %arg7[%c0_21, %c0_22], %43 {strides = array<i32>} : memref<2x512xf32, #tpu.memory_space<vmem>>, vector<2x512xf32>,
    %c0_23 = arith.constant 0 : index
    %c0_24 = arith.constant 0 : index
    %57 = vector.load %arg8[%c0_23, %c0_24] : memref<2x512xf32, #tpu.memory_space<vmem>>, vector<2x512xf32>
    tpu.vector_store %arg8[%c0_23, %c0_24], %52 {strides = array<i32>} : memref<2x512xf32, #tpu.memory_space<vmem>>, vector<2x512xf32>,
    return
  }
  func.func @transform_0(%arg0: i32) -> (i32, i32) {
    %c0_i32 = arith.constant 0 : i32
    %c0_i32_0 = arith.constant 0 : i32
    return %c0_i32, %arg0 : i32, i32
  }
  func.func @transform_1(%arg0: i32) -> (i32, i32) {
    %c0_i32 = arith.constant 0 : i32
    %c0_i32_0 = arith.constant 0 : i32
    return %c0_i32, %arg0 : i32, i32
  }
  func.func @transform_2(%arg0: i32) -> (i32, i32) {
    %c0_i32 = arith.constant 0 : i32
    %c0_i32_0 = arith.constant 0 : i32
    %c0_i32_1 = arith.constant 0 : i32
    return %c0_i32, %c0_i32_0 : i32, i32
  }
  func.func @transform_3(%arg0: i32) -> (i32, i32) {
    %c0_i32 = arith.constant 0 : i32
    %c0_i32_0 = arith.constant 0 : i32
    %c0_i32_1 = arith.constant 0 : i32
    return %c0_i32, %c0_i32_0 : i32, i32
  }
  func.func @transform_4(%arg0: i32) -> (i32, i32) {
    %c0_i32 = arith.constant 0 : i32
    %c0_i32_0 = arith.constant 0 : i32
    return %c0_i32, %arg0 : i32, i32
  }
  func.func @transform_5(%arg0: i32) -> (i32, i32) {
    %c0_i32 = arith.constant 0 : i32
    %c0_i32_0 = arith.constant 0 : i32
    return %c0_i32, %arg0 : i32, i32
  }
  func.func @transform_6(%arg0: i32) -> (i32, i32) {
    %c0_i32 = arith.constant 0 : i32
    %c0_i32_0 = arith.constant 0 : i32
    return %c0_i32, %arg0 : i32, i32
  }
  func.func @transform_7(%arg0: i32) -> (i32, i32) {
    %c0_i32 = arith.constant 0 : i32
    %c0_i32_0 = arith.constant 0 : i32
    return %c0_i32, %arg0 : i32, i32
  }
}

</mosaic_0001>

<bundles_post_ra>
// kernel: _lambda_.1
= control target key start
LH: loop header
LB: loop body
LE: loop exit
PB: predicated region body
PF: predicated region fallthrough
CT: control target
= control target key end

     0   :  { %s967_s24 = smov 0   ;;  %s1149_s0 = inlined_call_operand.vmem [shape: f32[2,1536], index: 0, kind: input, shape index: {}]   ;;  %s1150_s1 = inlined_call_operand.vmem [shape: f32[2,1536], index: 1, kind: input, shape index: {}]   ;;  %s1151_s2 = inlined_call_operand.vmem [shape: f32[2,1], index: 2, kind: input, shape index: {}]   ;;  %s1152_s3 = inlined_call_operand.vmem [shape: f32[2,1], index: 3, kind: input, shape index: {}]   ;;  %s1153_s4 = inlined_call_operand.vmem [shape: f32[2,1536], index: 4, kind: input, shape index: {}]   ;;  %s1154_s5 = inlined_call_operand.vmem [shape: f32[2,1536], index: 5, kind: output, shape index: {0}]   ;;  %s1155_s6 = inlined_call_operand.vmem [shape: f32[2,1536], index: 6, kind: output, shape index: {1}]   ;;  %s1156_s7 = inlined_call_operand.vmem [shape: f32[2,1536], index: 7, kind: output, shape index: {2}]  }
   0x1 LB: > { %s868_s25 = sadd.s32 4294967295, %s916_s24   ;;  %p872_p0 = scmp.ge.s32.totalorder %s916_s24, 1  ;;  %s916_s24 = sphi %s967_s24, %s18_s24  }
   0x2   : > { %p265_p1 = scmp.lt.s32.totalorder %s916_s24, 4 }
   0x4   : > { %p266_p2 = pnand %p872_p0, %p265_p1 }
   0x5   : > { %s885_s30 = sshll.u32 (!%p266_p2), %s868_s25, 9  ;;  %s873_s8 = sshll.u32 (!%p266_p2), %s868_s25, 2 }
   0x6   : > { %269 = sbr.rel (%p266_p2) target bundleno = 245 (0xf5), region = 40  ;;  %p318_p3 = scmp.lt.s32.totalorder (!%p266_p2), %s873_s8, 11 }
   0xb   : > { %v527_v0 = vld [vmem:[%s1151_s2] sm:$0x3]  ;;  %v918_v1 = vmov 0   ;;  %v354_v3 = vlaneseq  ;;  %v359_v8 = vstv %s885_s30  ;;  %s1160_s8 = smov (!%p318_p3, %s873_s8), 11 }
   0xc   : > { %909 = vset.pattern.permute.xlu0 %v918_v1  ;;  %v538_v2 = vld [vmem:[%s1152_s3] sm:$0x3]  ;;  %s1056_s9 = sshll.u32 %s1160_s8, 1 }
   0xd   : > { %530 = vperm.xlu0 %909, %v527_v0   ;;  %v355_v4 = vand.u32 127, %v354_v3  ;;  %s321_s12 = scalar_lea.vmem %s1149_s0, %s1056_s9  ;;  %s327_s15 = scalar_lea.vmem %s1150_s1, %s1056_s9 }
   0xe   : > { %s345_s18 = scalar_lea.vmem %s1155_s6, %s1056_s9  ;;  %s333_s21 = scalar_lea.vmem %s1153_s4, %s1056_s9 }
   0xf   : > { %v356_v5 = vadd.s32 128, %v355_v4  ;;  %v357_v6 = vadd.s32 256, %v355_v4  ;;  %v358_v7 = vadd.s32 384, %v355_v4  ;;  %v990_v12 = vadd.s32 %v359_v8, %v355_v4  ;;  %s351_s25 = scalar_lea.vmem %s1156_s7, %s1056_s9  ;;  %s339_s28 = scalar_lea.vmem %s1154_s5, %s1056_s9 }
  0x11   : > { %v984_v9 = vadd.s32 %v359_v8, %v356_v5  ;;  %v986_v10 = vadd.s32 %v359_v8, %v357_v6  ;;  %v988_v11 = vadd.s32 %v359_v8, %v358_v7  ;;  %v365_v16 = vsub.s32 0, %v990_v12 }
  0x12   : > { %vm364_vm3 = vcmp.lt.s32.totalorder %v990_v12, 0 }
  0x13   : > { %v394_v13 = vsub.s32 0, %v984_v9  ;;  %v423_v14 = vsub.s32 0, %v986_v10  ;;  %v452_v15 = vsub.s32 0, %v988_v11  ;;  %vm393_vm0 = vcmp.lt.s32.totalorder %v984_v9, 0 }
  0x14   : > { %vm422_vm1 = vcmp.lt.s32.totalorder %v986_v10, 0  ;;  %vm451_vm2 = vcmp.lt.s32.totalorder %v988_v11, 0  ;;  %v1015_v21 = vsel %vm364_vm3, %v365_v16, %v990_v12 }
  0x15   : > { %541 = vperm.xlu0 %909, %v538_v2   ;;  %v1002_v17 = vsel %vm393_vm0, %v394_v13, %v984_v9  ;;  %v1007_v18 = vsel %vm422_vm1, %v423_v14, %v986_v10  ;;  %v1020_v22 = vsel %vm451_vm2, %v452_v15, %v988_v11  ;;  %v367_v23 = vand.u32 65535, %v1015_v21 }
  0x16   : > { %v396_v19 = vand.u32 65535, %v1002_v17  ;;  %v425_v20 = vand.u32 65535, %v1007_v18  ;;  %v397_v24 = vshrl.u32 %v1002_v17, 16  ;;  %v426_v26 = vshrl.u32 %v1007_v18, 16 }
  0x17   : > { %v368_v28 = vshrl.u32 %v1015_v21, 16  ;;  %v371_v29 = vmul.u32 43690, %v367_v23  ;;  %v454_v35 = vand.u32 65535, %v1020_v22  ;;  %v370_v36 = vmul.u32 43691, %v367_v23 }
  0x18   : > { %v400_v25 = vmul.u32 43690, %v396_v19  ;;  %v429_v27 = vmul.u32 43690, %v425_v20  ;;  %v399_v30 = vmul.u32 43691, %v396_v19  ;;  %v401_v31 = vmul.u32 43691, %v397_v24 }
  0x19   : > { %v428_v33 = vmul.u32 43691, %v425_v20  ;;  %v430_v34 = vmul.u32 43691, %v426_v26  ;;  %v372_v37 = vmul.u32 43691, %v368_v28  ;;  %v374_v38 = vshll.u32 %v371_v29, 16 }
  0x1a   : > { %v403_v32 = vshll.u32 %v400_v25, 16  ;;  %v402_v39 = vmul.u32 43690, %v397_v24  ;;  %v405_v40 = vshll.u32 %v401_v31, 16  ;;  %v432_v42 = vshll.u32 %v429_v27, 16 }
  0x1b   : > { %v373_v43 = vmul.u32 43690, %v368_v28  ;;  %v376_v44 = vshll.u32 %v372_v37, 16  ;;  %vm378_vm5 = vc.u32 %v370_v36, %v374_v38  ;;  %v380_v45 = vadd.s32 %v374_v38, %v370_v36 }
  0x1c   : > { %vm407_vm4 = vc.u32 %v399_v30, %v403_v32  ;;  %v409_v41 = vadd.s32 %v403_v32, %v399_v30  ;;  %v379_v46 = vsel %vm378_vm5, 1, %v918_v1  ;;  %v455_v48 = vshrl.u32 %v1020_v22, 16 }
  0x1d   : > { %v408_v47 = vsel %vm407_vm4, 1, %v918_v1  ;;  %vm382_vm7 = vc.u32 %v380_v45, %v376_v44  ;;  %v404_v49 = vshrl.u32 %v400_v25, 16  ;;  %v431_v51 = vmul.u32 43690, %v426_v26 }
  0x1e   : > { %vm411_vm6 = vc.u32 %v409_v41, %v405_v40  ;;  %v410_v50 = vadd.s32 %v408_v47, %v402_v39  ;;  %v434_v53 = vshll.u32 %v430_v34, 16  ;;  %vm436_vm8 = vc.u32 %v428_v33, %v432_v42 }
  0x1f   : > { %v412_v52 = vsel %vm411_vm6, 1, %v918_v1  ;;  %v458_v54 = vmul.u32 43690, %v454_v35  ;;  %v381_v55 = vadd.s32 %v379_v46, %v373_v43  ;;  %v383_v57 = vsel %vm382_vm7, 1, %v918_v1 }
  0x20   : > { %v414_v56 = vadd.s32 %v412_v52, %v410_v50  ;;  %v437_v58 = vsel %vm436_vm8, 1, %v918_v1  ;;  %v438_v59 = vadd.s32 %v432_v42, %v428_v33  ;;  %v457_v60 = vmul.u32 43691, %v454_v35 }
  0x21   : > { %v406_v61 = vshrl.u32 %v401_v31, 16  ;;  %v433_v63 = vshrl.u32 %v429_v27, 16  ;;  %v439_v0 = vadd.s32 %v437_v58, %v431_v51  ;;  %v459_v2 = vmul.u32 43691, %v455_v48 }
  0x22   : > { %v415_v62 = vadd.s32 %v414_v56, %v404_v49  ;;  %vm440_vm9 = vc.u32 %v438_v59, %v434_v53  ;;  %v460_v3 = vmul.u32 43690, %v455_v48  ;;  %v461_v4 = vshll.u32 %v458_v54, 16 }
  0x23   : > { %v375_v5 = vshrl.u32 %v371_v29, 16  ;;  %v385_v6 = vadd.s32 %v383_v57, %v381_v55  ;;  %v441_v7 = vsel %vm440_vm9, 1, %v918_v1  ;;  %v435_v8 = vshrl.u32 %v430_v34, 16 }
  0x24   : > { %v443_v13 = vadd.s32 %v441_v7, %v439_v0  ;;  %v463_v14 = vshll.u32 %v459_v2, 16  ;;  %vm465_vm10 = vc.u32 %v457_v60, %v461_v4  ;;  %v416_v15 = vadd.s32 %v415_v62, %v406_v61 }
  0x25   : > { %v466_v16 = vsel %vm465_vm10, 1, %v918_v1  ;;  %v467_v19 = vadd.s32 %v461_v4, %v457_v60  ;;  %v377_v24 = vshrl.u32 %v372_v37, 16  ;;  %v386_v25 = vadd.s32 %v385_v6, %v375_v5 }
  0x26   : > { %v444_v20 = vadd.s32 %v443_v13, %v433_v63  ;;  %v468_v23 = vadd.s32 %v466_v16, %v460_v3  ;;  %v462_v26 = vshrl.u32 %v458_v54, 16  ;;  %v417_v29 = vshrl.u32 %v416_v15, 7  ;;  %v1062_v3 = vld [vmem:[%s321_s12] sm:$0xff] }
  0x27   : > { %vm469_vm11 = vc.u32 %v467_v19, %v463_v14  ;;  %v464_v30 = vshrl.u32 %v459_v2, 16  ;;  %v387_v33 = vadd.s32 %v386_v25, %v377_v24  ;;  %vm517_vm8 = vcmask 1041408   ;;  %v525_v19 = vld [vmem:[%s327_s15] sm:$0xff] }
  0x28   : > { %v445_v27 = vadd.s32 %v444_v20, %v435_v8  ;;  %v470_v28 = vsel %vm469_vm11, 1, %v918_v1  ;;  %v418_v35 = vmul.u32 192, %v417_v29  ;;  %vm519_vm9 = vcmask 1045508  }
  0x29   : > { %v472_v31 = vadd.s32 %v470_v28, %v468_v23  ;;  %v388_v39 = vshrl.u32 %v387_v33, 7  ;;  %vm521_vm10 = vcmask 1043456   ;;  %v509_v6 = vmul.f32 6.25e-05, %v1062_v3 }
  0x2a   : > { %v446_v32 = vshrl.u32 %v445_v27, 7  ;;  %v419_v41 = vsub.s32 %v1002_v17, %v418_v35  ;;  %v919_v7 = vmov 269488144   ;;  %v925_v9 = vmov 1326507024  }
  0x2b   : > { %v473_v34 = vadd.s32 %v472_v31, %v462_v26  ;;  %v389_v43 = vmul.u32 192, %v388_v39  ;;  %v533_v8 = vunpack.c.l.s4 %v919_v7 }
  0x2c   : > { %v447_v38 = vmul.u32 192, %v446_v32  ;;  %v420_v45 = vsub.s32 0, %v419_v41 }
  0x2d   : > { %v474_v36 = vadd.s32 %v473_v34, %v464_v30  ;;  %v390_v47 = vsub.s32 %v1015_v21, %v389_v43  ;;  %v534_v16 = vunpack.c.0.s8 %v533_v8 }
  0x2e   : > { %v448_v42 = vsub.s32 %v1007_v18, %v447_v38  ;;  %v421_v49 = vsel %vm393_vm0, %v420_v45, %v419_v41  ;;  %v920_v41 = vmov 683565275   ;;  %v922_v45 = vmov 2131351028  }
  0x2f   : > { %v475_v40 = vshrl.u32 %v474_v36, 7  ;;  %v391_v51 = vsub.s32 0, %v390_v47  ;;  %vm481_vm12 = vcmp.ne.s32.totalorder %v421_v49, 0  ;;  %vm485_vm13 = vcmp.lt.s32.totalorder %v421_v49, 0 }
  0x30   : > { %v449_v46 = vsub.s32 0, %v448_v42  ;;  %vm1048_vm6 = vmand %vm485_vm13, %vm481_vm12  ;;  %v493_v10 = vadd.s32 192, %v421_v49 }
  0x31   : > { %v476_v37 = vmul.u32 192, %v475_v40  ;;  %v392_v18 = vsel %vm364_vm3, %v391_v51, %v390_v47  ;;  %v924_v51 = vmov 920167782  }
  0x32   : > { %v450_v50 = vsel %vm422_vm1, %v449_v46, %v448_v42  ;;  %vm484_vm7 = vcmp.lt.s32.totalorder %v392_v18, 0  ;;  %v492_v11 = vadd.s32 192, %v392_v18  ;;  %v497_v52 = vsel %vm1048_vm6, %v493_v10, %v421_v49 }
  0x33   : > { %v477_v44 = vsub.s32 %v1020_v22, %v476_v37  ;;  %vm482_vm14 = vcmp.ne.s32.totalorder %v450_v50, 0  ;;  %vm486_vm15 = vcmp.lt.s32.totalorder %v450_v50, 0  ;;  %v494_v21 = vadd.s32 192, %v450_v50 }
  0x34   : > { %vm490_vm0 = vmand %vm486_vm15, %vm482_vm14  ;;  %v501_v54 = vadd.s32 1, %v497_v52  ;;  %v921_v42 = vmov 2475754826  }
  0x35   : > { %v478_v48 = vsub.s32 0, %v477_v44  ;;  %v498_v12 = vsel %vm490_vm0, %v494_v21, %v450_v50 }
  0x36   : > { %v502_v55 = vadd.s32 1, %v498_v12  ;;  %v505_v59 = vcvt.s32.f32 %v501_v54 }
  0x37   : > { %v479_v17 = vsel %vm451_vm2, %v478_v48, %v477_v44  ;;  %vm480_vm2 = vcmp.ne.s32.totalorder %v392_v18, 0  ;;  %v923_v48 = vmov 2102212464  }
  0x38   : > { %vm483_vm4 = vcmp.ne.s32.totalorder %v479_v17, 0  ;;  %vm487_vm5 = vcmp.lt.s32.totalorder %v479_v17, 0  ;;  %v495_v22 = vadd.s32 192, %v479_v17  ;;  %vm488_vm3 = vmand %vm484_vm7, %vm480_vm2  ;;  %v506_v60 = vcvt.s32.f32 %v502_v55 }
  0x39   : > { %vm491_vm1 = vmand %vm487_vm5, %vm483_vm4  ;;  %v496_v57 = vsel %vm488_vm3, %v492_v11, %v392_v18  ;;  %v514_v63 = vrot.slane %v505_v59, 6  ;;  %vm706_vm3 = vcmp.gt.f32.partialorder %v1062_v3, 0.0 }
  0x3a   : > { %v499_v53 = vsel %vm491_vm1, %v495_v22, %v479_v17  ;;  %v500_v58 = vadd.s32 1, %v496_v57  ;;  %v515_v0 = vrot.slane %v506_v60, 4 }
  0x3b   : > { %v503_v56 = vadd.s32 1, %v499_v53 }
  0x3c   : > { %v504_v62 = vcvt.s32.f32 %v500_v58 }
  0x3d   : > { %v507_v61 = vcvt.s32.f32 %v503_v56 }
  0x3e   : > { %v518_v4 = vsel %vm517_vm8, %v504_v62, %v514_v63 }
  0x3f   : > { %v516_v2 = vrot.slane %v507_v61, 2 }
  0x41   : > { %v520_v5 = vsel %vm519_vm9, %v515_v0, %v516_v2 }
  0x42   : > { %v522_v13 = vsel %vm521_vm10, %v518_v4, %v520_v5 }
  0x43   : > { %v524_v15 = vmul.f32 %v522_v13, %v509_v6 }
  0x45   : > { %v526_v20 = vadd.f32 %v525_v19, %v524_v15 }
  0x7f   : > { %v531_v14 = vpop.permute.xlu0 %530 }
  0x80   : > { %v535_v23 = vperm.slane %v531_v14, %v534_v16 }
  0x82   : > { %v537_v25 = vmul.f32 %v535_v23, %v526_v20 }
  0x87   : > { %v542_v24 = vpop.permute.xlu0 %541 }
  0x88   : > { %v546_v26 = vperm.slane %v542_v24, %v534_v16 }
  0x8a   : > { %v548_v27 = vadd.f32 %v546_v26, %v537_v25 }
  0x8c   : > { %v1069_v28 = vmul.f32 6.2831855, %v548_v27 }
  0x8e   : > { %v553_v29 = vand.u32 2139095040, %v1069_v28  ;;  %v550_v32 = vand.u32 2147483647, %v1069_v28  ;;  %vm552_vm8 = vcmp.lt.s32.totalorder %v1069_v28, 0 }
  0x90   : > { %v554_v30 = vshrl.u32 %v553_v29, 23  ;;  %v557_v34 = vand.u32 8388607, %v550_v32  ;;  %vm551_vm9 = vcmp.le.f32.partialorder %v550_v32, 0.7853982 }
  0x92   : > { %v886_v31 = vadd.s32 4294967169, %v554_v30  ;;  %v558_v39 = vor.u32 8388608, %v557_v34 }
  0x94   : > { %v560_v33 = vadd.s32 1, %v886_v31  ;;  %v1086_v53 = vshll.u32 %v558_v39, 8 }
  0x96   : > { %vm561_vm11 = vcmp.gt.s32.totalorder %v560_v33, 0  ;;  %v599_v62 = vand.u32 65535, %v1086_v53  ;;  %v600_v63 = vshrl.u32 %v1086_v53, 16 }
  0x97   : > { %v562_v35 = vsel %vm561_vm11, %v560_v33, 0 }
  0x98   : > { %v564_v36 = vand.u32 31, %v562_v35  ;;  %v1077_v40 = vshrl.u32 %v562_v35, 5 }
  0x9a   : > { %v1075_v38 = vsub.s32 32, %v564_v36  ;;  %v567_v37 = vshll.u32 %v920_v41, %v564_v36  ;;  %v570_v43 = vshll.u32 %v921_v42, %v564_v36  ;;  %v573_v47 = vshll.u32 %v922_v45, %v564_v36 }
  0x9b   : > { %v576_v50 = vshll.u32 %v923_v48, %v564_v36  ;;  %v579_v18 = vshll.u32 %v924_v51, %v564_v36  ;;  %vm582_vm12 = vcmp.lt.s32.totalorder %v1077_v40, 1  ;;  %vm585_vm13 = vcmp.lt.s32.totalorder %v1077_v40, 4 }
  0x9c   : > { %v568_v44 = vshrl.u32 %v921_v42, %v1075_v38  ;;  %v571_v46 = vshrl.u32 %v922_v45, %v1075_v38  ;;  %v574_v49 = vshrl.u32 %v923_v48, %v1075_v38  ;;  %v577_v17 = vshrl.u32 %v924_v51, %v1075_v38 }
  0x9d   : > { %v580_v10 = vshrl.u32 %v925_v9, %v1075_v38  ;;  %vm584_vm14 = vcmp.lt.s32.totalorder %v1077_v40, 3  ;;  %vm583_vm15 = vcmp.lt.s32.totalorder %v1077_v40, 2  ;;  %v566_v36 = vshrl.u32 %v920_v41, %v1075_v38 }
  0x9e   : > { %v569_v21 = vor.u32 %v568_v44, %v567_v37  ;;  %v572_v22 = vor.u32 %v571_v46, %v570_v43  ;;  %v575_v11 = vor.u32 %v574_v49, %v573_v47  ;;  %v578_v52 = vor.u32 %v577_v17, %v576_v50 }
  0x9f   : > { %v581_v12 = vor.u32 %v580_v10, %v579_v18 }
  0xa0   : > { %v590_v54 = vsel %vm582_vm12, %v569_v21, %v572_v22  ;;  %v594_v55 = vsel %vm582_vm12, %v572_v22, %v575_v11  ;;  %v591_v56 = vsel %vm585_vm13, %v578_v52, 920167782  ;;  %v587_v33 = vsel %vm585_vm13, %v575_v11, 2102212464 }
  0xa1   : > { %v595_v57 = vsel %vm585_vm13, %v581_v12, 1326507024  ;;  %v592_v58 = vsel %vm584_vm14, %v575_v11, %v591_v56  ;;  %v586_v45 = vsel %vm582_vm12, %v566_v36, %v569_v21  ;;  %v588_v46 = vsel %vm584_vm14, %v572_v22, %v587_v33 }
  0xa2   : > { %v596_v59 = vsel %vm584_vm14, %v578_v52, %v595_v57  ;;  %v593_v60 = vsel %vm583_vm15, %v590_v54, %v592_v58  ;;  %v589_v38 = vsel %vm583_vm15, %v586_v45, %v588_v46  ;;  %vm693_vm13 = vweird.f32 %v1069_v28 }
  0xa3   : > { %v597_v61 = vsel %vm583_vm15, %v594_v55, %v596_v59  ;;  %v623_v4 = vand.u32 65535, %v593_v60  ;;  %v624_v5 = vshrl.u32 %v593_v60, 16  ;;  %v643_v18 = vmul.u32 %v1086_v53, %v589_v38 }
  0xa4   : > { %v601_v0 = vand.u32 65535, %v597_v61  ;;  %v602_v2 = vshrl.u32 %v597_v61, 16 }
  0xa5   : > { %v626_v8 = vmul.u32 %v624_v5, %v599_v62  ;;  %v627_v13 = vmul.u32 %v623_v4, %v600_v63  ;;  %v625_v19 = vmul.u32 %v623_v4, %v599_v62  ;;  %v628_v25 = vmul.u32 %v624_v5, %v600_v63 }
  0xa6   : > { %v604_v6 = vmul.u32 %v602_v2, %v599_v62  ;;  %v605_v7 = vmul.u32 %v601_v0, %v600_v63  ;;  %v603_v14 = vmul.u32 %v601_v0, %v599_v62  ;;  %v606_v16 = vmul.u32 %v602_v2, %v600_v63 }
  0xa7   : > { %v629_v20 = vshll.u32 %v626_v8, 16  ;;  %v631_v27 = vshll.u32 %v627_v13, 16  ;;  %v630_v43 = vshrl.u32 %v626_v8, 16  ;;  %v632_v49 = vshrl.u32 %v627_v13, 16  ;;  %v713_v8 = vld [vmem:[%s333_s21] sm:$0xff] }
  0xa8   : > { %v607_v15 = vshll.u32 %v604_v6, 16  ;;  %v609_v23 = vshll.u32 %v605_v7, 16  ;;  %v608_v39 = vshrl.u32 %v604_v6, 16  ;;  %v610_v47 = vshrl.u32 %v605_v7, 16 }
  0xa9   : > { %vm633_vm5 = vc.u32 %v625_v19, %v629_v20  ;;  %v635_v29 = vadd.s32 %v629_v20, %v625_v19  ;;  %v926_v62 = vmov 0.0  }
  0xaa   : > { %vm611_vm4 = vc.u32 %v603_v14, %v607_v15  ;;  %v613_v24 = vadd.s32 %v607_v15, %v603_v14  ;;  %v634_v31 = vsel %vm633_vm5, 1, %v918_v1  ;;  %v889_v63 = vsel %vm706_vm3, 1.0, %v926_v62 }
  0xab   : > { %v612_v26 = vsel %vm611_vm4, 1, %v918_v1  ;;  %v636_v35 = vadd.s32 %v634_v31, %v628_v25  ;;  %vm637_vm0 = vc.u32 %v635_v29, %v631_v27  ;;  %v639_v17 = vadd.s32 %v635_v29, %v631_v27  ;;  %718 = vst [vmem:[%s345_s18] sm:$0xff] %v889_v63 }
  0xac   : > { %v614_v30 = vadd.s32 %v612_v26, %v606_v16  ;;  %vm615_vm6 = vc.u32 %v613_v24, %v609_v23  ;;  %v638_v42 = vsel %vm637_vm0, 1, %v918_v1  ;;  %v710_v0 = vsub.f32 1.0, %v889_v63 }
  0xad   : > { %v616_v34 = vsel %vm615_vm6, 1, %v918_v1  ;;  %v640_v44 = vadd.s32 %v638_v42, %v636_v35  ;;  %v709_v5 = vmul.f32 0.003, %v889_v63 }
  0xae   : > { %v618_v37 = vadd.s32 %v616_v34, %v614_v30  ;;  %v711_v6 = vmul.f32 0.033333335, %v710_v0 }
  0xaf   : > { %v641_v50 = vadd.s32 %v640_v44, %v630_v43 }
  0xb0   : > { %v619_v48 = vadd.s32 %v618_v37, %v608_v39  ;;  %v712_v13 = vadd.f32 %v711_v6, %v709_v5 }
  0xb1   : > { %v642_v41 = vadd.s32 %v641_v50, %v632_v49 }
  0xb2   : > { %v620_v51 = vadd.s32 %v619_v48, %v610_v47  ;;  %v714_v15 = vmul.f32 %v713_v8, %v712_v13 }
  0xb3   : > { %v646_v1 = vadd.s32 1, %v642_v41 }
  0xb4   : > { %vm645_vm1 = vc.u32 %v620_v51, %v639_v17  ;;  %v644_v57 = vadd.s32 %v639_v17, %v620_v51  ;;  %719 = vst [vmem:[%s351_s25] sm:$0xff] %v714_v15 }
  0xb5   : > { %v647_v9 = vsel %vm645_vm1, %v646_v1, %v642_v41 }
  0xb6   : > { %v648_v10 = vadd.s32 %v647_v9, %v643_v18 }
  0xb8   : > { %v649_v21 = vadd.s32 536870912, %v648_v10 }
  0xba   : > { %v650_v11 = vshrl.u32 %v649_v21, 30 }
  0xbc   : > { %v651_v22 = vshll.u32 %v650_v11, 30  ;;  %v674_v23 = vsub.s32 4, %v650_v11 }
  0xbe   : > { %v652_v52 = vsub.s32 %v648_v10, %v651_v22  ;;  %v675_v29 = vsel %vm552_vm8, %v674_v23, %v650_v11 }
  0xbf   : > { %v677_v33 = vsel %vm551_vm9, 0, %v675_v29 }
  0xc0   : > { %vm653_vm2 = vcmp.lt.s32.totalorder %v652_v52, 0  ;;  %v654_v12 = vsub.s32 0, %v652_v52  ;;  %v694_v37 = vadd.s32 3, %v677_v33 }
  0xc2   : > { %v655_v54 = vsel %vm653_vm2, %v654_v12, %v652_v52  ;;  %v695_v45 = vand.u32 3, %v694_v37 }
  0xc3   : > { %v656_v55 = vclz %v655_v54 }
  0xc4   : > { %vm697_vm10 = vcmp.eq.s32.totalorder %v695_v45, 0  ;;  %vm700_vm11 = vcmp.eq.s32.totalorder %v695_v45, 2  ;;  %vm696_vm12 = vcmp.lt.s32.totalorder %v695_v45, 2 }
  0xc5   : > { %v887_v56 = vadd.s32 4294967294, %v656_v55 }
  0xc7   : > { %vm888_vm7 = vcmp.lt.s32.totalorder %v887_v56, 0 }
  0xc8   : > { %v659_v40 = vsel %vm888_vm7, 0, %v887_v56 }
  0xc9   : > { %v660_v53 = vsub.s32 32, %v659_v40  ;;  %v664_v58 = vsub.s32 4294967266, %v659_v40  ;;  %v661_v59 = vshll.u32 %v652_v52, %v659_v40 }
  0xcb   : > { %v662_v60 = vshrl.u32 %v644_v57, %v660_v53  ;;  %v665_v61 = vadd.s32 127, %v664_v58 }
  0xcd   : > { %v663_v2 = vor.u32 %v662_v60, %v661_v59  ;;  %v666_v4 = vshll.u32 %v665_v61, 23 }
  0xcf   : > { %v667_v7 = vor.u32 4788187, %v666_v4  ;;  %v670_v14 = vcvt.s32.f32 %v663_v2 }
  0xd1   : > { %v668_v3 = vand.u32 2147483647, %v667_v7 }
  0xd3   : > { %v671_v16 = vmul.f32 %v670_v14, %v668_v3 }
  0xd5   : > { %v672_v19 = vxor.u32 2147483648, %v671_v16 }
  0xd7   : > { %v673_v20 = vsel %vm552_vm8, %v672_v19, %v671_v16 }
  0xd8   : > { %v676_v24 = vsel %vm551_vm9, %v1069_v28, %v673_v20 }
  0xd9   : > { %v678_v25 = vmul.f32 %v676_v24, %v676_v24 }
  0xdb   : > { %v679_v26 = vmul.f32 -0.001358992, %v678_v25  ;;  %v686_v27 = vmul.f32 -0.00019511016, %v678_v25 }
  0xdd   : > { %v680_v30 = vadd.f32 0.041655596, %v679_v26  ;;  %v687_v31 = vadd.f32 0.008332121, %v686_v27 }
  0xdf   : > { %v681_v34 = vmul.f32 %v680_v30, %v678_v25  ;;  %v688_v35 = vmul.f32 %v687_v31, %v678_v25 }
  0xe1   : > { %v682_v36 = vadd.f32 -0.4999988, %v681_v34  ;;  %v689_v39 = vadd.f32 -0.16666654, %v688_v35 }
  0xe3   : > { %v683_v42 = vmul.f32 %v682_v36, %v678_v25  ;;  %v690_v43 = vmul.f32 %v689_v39, %v678_v25 }
  0xe5   : > { %v684_v44 = vadd.f32 1.0, %v683_v42  ;;  %v691_v32 = vadd.f32 1.0, %v690_v43 }
  0xe7   : > { %v692_v46 = vmul.f32 %v691_v32, %v676_v24  ;;  %v701_v47 = vxor.u32 2147483648, %v684_v44 }
  0xe9   : > { %v698_v48 = vxor.u32 2147483648, %v692_v46  ;;  %v702_v50 = vsel %vm700_vm11, %v701_v47, %v692_v46 }
  0xeb   : > { %v699_v49 = vsel %vm697_vm10, %v684_v44, %v698_v48 }
  0xec   : > { %v703_v51 = vsel %vm696_vm12, %v699_v49, %v702_v50 }
  0xed   : > { %v704_v17 = vsel %vm693_vm13, nan, %v703_v51 }
  0xee   : > { %v705_v38 = vmul.f32 0.1, %v704_v17 }
  0xf0   : > { %v715_v41 = vmul.f32 %v889_v63, %v705_v38 }
  0xf2   : > { %v716_v1 = vadd.f32 %v715_v41, %v714_v15 }
  0xf4   : > { %717 = vst [vmem:[%s339_s28] sm:$0xff] %v716_v1 }
  0xf5 PF: > { %s18_s24 = sadd.s32 1, %s916_s24  }
  0xf6   : > { %p15_p4 = scmp.ge.s32.totalorder %s18_s24, 5  }
  0xf8   :  { %17 = sbr.rel (!%p15_p4) target bundleno = 1 (0x1), region = 100 }

</bundles_post_ra>
